<compile_context>
chip_gen: v7x
topology: tpu7x:2x2x1
jax: 0.10.0
libtpu: 0.0.40
codegen_flags: <defaults>
</compile_context>

<pallas_src>
import math

import jax
import jax.numpy as jnp
from jax.experimental import pallas as pl
from jax.experimental.pallas import tpu as pltpu

EPS = 1e-5                      # PyTorch LayerNorm default
_INV_SQRT2 = 1.0 / math.sqrt(2.0)


def _geglu_block_kernel(
    x_ref,                      # (1, C, TS)  tokens, channels-first
    side_ref,                   # (1, C, 8)   packed f32: [attn, g2, b2, bm1, bm2, 0, 0, 0]
    w_ref,                      # (2C, C)     fused GEGLU weight [wm1.T ; wm2.T]
    out_ref,                    # (1, C, TS)
):
    C = x_ref.shape[1]

    x = x_ref[0].astype(jnp.float32)                      # (C, TS)
    side = side_ref[0]                                    # (C, 8) f32
    attn = side[:, 0:1]
    g2, b2 = side[:, 1:2], side[:, 2:3]
    bm1, bm2 = side[:, 3:4], side[:, 4:5]

    # residual with the per-batch attention row (lane-broadcast)
    x = x + attn

    # LayerNorm over the channel (sublane) axis — single pass over x, f32 stats
    mu = jnp.mean(x, axis=0, keepdims=True)               # (1, TS)
    ms = jnp.mean(x * x, axis=0, keepdims=True)
    var = ms - mu * mu
    xn = (x - mu) * jax.lax.rsqrt(var + EPS) * g2 + b2

    # fused GEGLU matmul: (2C, C) @ (C, TS); split h along sublanes (C % 8 == 0)
    xn_c = xn.astype(w_ref.dtype)
    h = jnp.dot(w_ref[...], xn_c, preferred_element_type=jnp.float32)   # (2C, TS)
    h1 = h[:C, :] + bm1
    h2 = h[C:, :] + bm2
    gelu2 = 0.5 * h2 * (1.0 + jax.lax.erf(h2 * _INV_SQRT2))             # exact (erf) GELU

    out_ref[0] = (x + h1 * gelu2).astype(out_ref.dtype)


def _pick_token_tile(S, token_tile):
    if S <= token_tile:
        return S
    best = None
    for cand in range(128, token_tile + 1, 128):
        if S % cand == 0:
            best = cand
    return best if best is not None else S


def cross_attention_block_2d(x, cond, params, num_heads=8, *,
                             token_tile=512, compute_dtype=jnp.bfloat16,
                             vmem_limit_bytes=48 * 1024 * 1024):
    """x: (B, C, H, W) NCHW, cond: (B, cond_dim). Returns (B, C, H, W)."""
    B, C, H, W = x.shape
    S = H * W
    assert C % num_heads == 0
    # Single key/value token (cond.unsqueeze(1) in PyTorch) — the algebraic
    # collapse below is ONLY valid for kv_len == 1.
    assert cond.ndim == 2, "cond must be (B, cond_dim); this block assumes kv_len == 1"
    f32 = jnp.float32

    # ---- attention row (softmax over 1 key == 1), 3 matmuls folded into 1 ----
    wc, bc = params["wc"].astype(f32), params["bc"].astype(f32)
    wv, bv = params["wv"].astype(f32), params["bv"].astype(f32)
    wo, bo = params["wo"].astype(f32), params["bo"].astype(f32)
    w_attn = wc @ wv @ wo                                   # (cond_dim, C)
    b_attn = (bc @ wv + bv) @ wo + bo                       # (C,)
    attn_row = cond.astype(f32) @ w_attn + b_attn           # (B, C)

    # ---- packed per-channel side operands: (B, C, 8) f32 ----
    consts = jnp.stack([params["g2"], params["b2"],
                        params["bm1"], params["bm2"]], axis=-1).astype(f32)   # (C, 4)
    side = jnp.concatenate(
        [attn_row[:, :, None],
         jnp.broadcast_to(consts[None], (B, C, 4)),
         jnp.zeros((B, C, 3), f32)], axis=-1)               # (B, C, 8)

    # ---- fused GEGLU weight; kernel computes w @ x (channels-first) ----
    w_cat = jnp.concatenate([params["wm1"].T, params["wm2"].T],
                            axis=0).astype(compute_dtype)   # (2C, C)

    x_cf = x.reshape(B, C, S)
    ts = _pick_token_tile(S, token_tile)
    # keep the grid splittable across v7x's two TensorCores
    if B * (S // ts) < 2 and ts % 256 == 0:
        ts //= 2
    assert S % ts == 0 and (ts % 128 == 0 or ts == S)
    grid = (B, S // ts)

    x_bytes = jnp.dtype(x.dtype).itemsize
    w_bytes = jnp.dtype(compute_dtype).itemsize
    cost = pl.CostEstimate(
        flops=4 * B * S * C * C + 14 * B * S * C,
        transcendentals=B * S * C,
        bytes_accessed=2 * B * S * C * x_bytes + 2 * C * C * w_bytes + B * C * 8 * 4,
    )

    def build(weight_pipeline_mode):
        if weight_pipeline_mode is None:
            w_spec = pl.BlockSpec((2 * C, C), lambda b, t: (0, 0))
        else:
            w_spec = pl.BlockSpec((2 * C, C), lambda b, t: (0, 0),
                                  pipeline_mode=weight_pipeline_mode)
        return pl.pallas_call(
            _geglu_block_kernel,
            out_shape=jax.ShapeDtypeStruct((B, C, S), x.dtype),
            grid=grid,
            in_specs=[
                pl.BlockSpec((1, C, ts), lambda b, t: (b, 0, t)),   # x tokens
                pl.BlockSpec((1, C, 8), lambda b, t: (b, 0, 0)),    # packed side operands
                w_spec,                                             # fused GEGLU weight
            ],
            out_specs=pl.BlockSpec((1, C, ts), lambda b, t: (b, 0, t)),
            compiler_params=pltpu.CompilerParams(
                dimension_semantics=("parallel", "parallel"),
                vmem_limit_bytes=vmem_limit_bytes,
            ),
            cost_estimate=cost,
        )

    try:
        out_cf = build(pl.Buffered(1))(x_cf, side, w_cat)
    except Exception:
        # Fallback if this JAX build rejects single-buffered pipeline_mode.
        out_cf = build(None)(x_cf, side, w_cat)

    return out_cf.reshape(B, C, H, W)


def reference(x, cond, p, num_heads=8):
    """Pure-JAX reference mirroring the FULL PyTorch forward (incl. norm1, q/k
    projections and softmax over the single key), to prove the kernel's
    kv_len==1 simplification preserves the module semantics."""
    B, C, H, W = x.shape
    S = H * W
    dh = C // num_heads
    xs = jnp.transpose(x.reshape(B, C, S), (0, 2, 1)).astype(jnp.float32)

    def ln(z, g, b):
        mu = z.mean(-1, keepdims=True)
        var = ((z - mu) ** 2).mean(-1, keepdims=True)
        return (z - mu) / jnp.sqrt(var + EPS) * g + b

    xn = ln(xs, p["g1"], p["b1"])
    kv = cond.astype(jnp.float32) @ p["wc"] + p["bc"]                     # (B, C)
    q = xn @ p["wq"] + p["bq"]                                            # (B, S, C)
    k = kv @ p["wk"] + p["bk"]                                            # (B, C)
    v = kv @ p["wv"] + p["bv"]                                            # (B, C)
    qh = q.reshape(B, S, num_heads, dh)
    kh = k.reshape(B, 1, num_heads, dh)
    vh = v.reshape(B, 1, num_heads, dh)
    scores = jnp.einsum("bsnd,bknd->bnsk", qh, kh) / math.sqrt(dh)        # (B,nH,S,1)
    w = jax.nn.softmax(scores, axis=-1)                                   # == 1
    attn = jnp.einsum("bnsk,bknd->bsnd", w, vh).reshape(B, S, C)
    attn_out = attn @ p["wo"] + p["bo"]
    xs = xs + attn_out
    xn2 = ln(xs, p["g2"], p["b2"])
    h1 = xn2 @ p["wm1"] + p["bm1"]
    h2 = xn2 @ p["wm2"] + p["bm2"]
    xs = xs + h1 * (0.5 * h2 * (1.0 + jax.lax.erf(h2 * _INV_SQRT2)))
    return jnp.transpose(xs, (0, 2, 1)).reshape(B, C, H, W)


def make_params(key, channels, cond_dim):
    C = channels
    ks = jax.random.split(key, 18)
    r = lambda k, shape, s=0.05: jax.random.normal(k, shape, jnp.float32) * s
    return {
        # LayerNorm 1 / 2
        "g1": 1.0 + r(ks[0], (C,), 0.1), "b1": r(ks[1], (C,), 0.1),
        "g2": 1.0 + r(ks[2], (C,), 0.1), "b2": r(ks[3], (C,), 0.1),
        # MHA in-projections (already transposed: y = x @ W + b)
        "wq": r(ks[4], (C, C)), "bq": r(ks[5], (C,)),
        "wk": r(ks[6], (C, C)), "bk": r(ks[7], (C,)),
        "wv": r(ks[8], (C, C)), "bv": r(ks[9], (C,)),
        # MHA out-projection
        "wo": r(ks[10], (C, C)), "bo": r(ks[11], (C,)),
        # GEGLU proj Linear(C, 2C), stored as the two C-wide halves
        "wm1": r(ks[12], (C, C)), "bm1": r(ks[13], (C,)),
        "wm2": r(ks[14], (C, C)), "bm2": r(ks[15], (C,)),
        # cond_proj Linear(cond_dim, C) (transposed)
        "wc": r(ks[16], (cond_dim, C)), "bc": r(ks[17], (C,)),
    }


if __name__ == "__main__":
    B, C, H, W = 2, 32, 16, 16        # channels divisible by num_heads=8
    cond_dim = 16
    num_heads = 8

    key = jax.random.PRNGKey(0)
    kx, kc, kp = jax.random.split(key, 3)
    x = jax.random.normal(kx, (B, C, H, W), jnp.float32)
    cond = jax.random.normal(kc, (B, cond_dim), jnp.float32)
    params = make_params(kp, C, cond_dim)

    # f32-weight path: check against the full (softmax-included) reference
    out = cross_attention_block_2d(x, cond, params, num_heads=num_heads,
                                   compute_dtype=jnp.float32)
    out = jax.block_until_ready(out)
    ref = reference(x, cond, params, num_heads=num_heads)
    assert out.shape == (B, C, H, W)
    assert jnp.all(jnp.isfinite(out))
    assert jnp.allclose(out, ref, atol=2e-3, rtol=2e-3)

    # default path: bf16 GEGLU weights / bf16 tokens, f32 accumulation + stats
    out_bf16 = cross_attention_block_2d(x.astype(jnp.bfloat16), cond, params,
                                        num_heads=num_heads)
    out_bf16 = jax.block_until_ready(out_bf16)
    assert jnp.all(jnp.isfinite(out_bf16.astype(jnp.float32)))
    assert jnp.allclose(out_bf16.astype(jnp.float32), ref, atol=1e-1, rtol=1e-1)

    print("KERNEL_OK")
</pallas_src>

<mosaic_0001>
module attributes {stable_mosaic.version = 11 : i64} {
  func.func @_geglu_block_kernel(%arg0: i32, %arg1: i32, %arg2: memref<1x32x256xf32, #tpu.memory_space<vmem>>, %arg3: memref<1x32x8xf32, #tpu.memory_space<vmem>>, %arg4: memref<64x32xf32, #tpu.memory_space<vmem>>, %arg5: memref<1x32x256xf32, #tpu.memory_space<vmem>>) attributes {dimension_semantics = [#tpu.dimension_semantics<parallel>, #tpu.dimension_semantics<parallel>], iteration_bounds = array<i64: 2, 1>, scalar_prefetch = 0 : i64, scratch_operands = 0 : i64, tpu.core_type = #tpu.core_type<tc>, window_params = [{transform_indices = @transform_0, window_bounds = array<i64: 1, 32, 256>}, {transform_indices = @transform_1, window_bounds = array<i64: 1, 32, 8>}, {pipeline_mode = #tpu.pipeline_mode<synchronous>, transform_indices = @transform_2, window_bounds = array<i64: 64, 32>}, {transform_indices = @transform_3, window_bounds = array<i64: 1, 32, 256>}]} {
    %c0 = arith.constant 0 : index
    %c0_0 = arith.constant 0 : index
    %c0_1 = arith.constant 0 : index
    %0 = vector.load %arg2[%c0, %c0_0, %c0_1] : memref<1x32x256xf32, #tpu.memory_space<vmem>>, vector<1x32x256xf32>
    %1 = vector.shape_cast %0 : vector<1x32x256xf32> to vector<32x256xf32>
    %c0_2 = arith.constant 0 : index
    %c0_3 = arith.constant 0 : index
    %c0_4 = arith.constant 0 : index
    %2 = vector.load %arg3[%c0_2, %c0_3, %c0_4] : memref<1x32x8xf32, #tpu.memory_space<vmem>>, vector<1x32x8xf32>
    %3 = vector.shape_cast %2 : vector<1x32x8xf32> to vector<32x8xf32>
    %4 = vector.extract_strided_slice %3 {offsets = [0, 0], sizes = [32, 1], strides = [1, 1]} : vector<32x8xf32> to vector<32x1xf32>
    %5 = vector.extract_strided_slice %3 {offsets = [0, 1], sizes = [32, 1], strides = [1, 1]} : vector<32x8xf32> to vector<32x1xf32>
    %6 = vector.extract_strided_slice %3 {offsets = [0, 2], sizes = [32, 1], strides = [1, 1]} : vector<32x8xf32> to vector<32x1xf32>
    %7 = vector.extract_strided_slice %3 {offsets = [0, 3], sizes = [32, 1], strides = [1, 1]} : vector<32x8xf32> to vector<32x1xf32>
    %8 = vector.extract_strided_slice %3 {offsets = [0, 4], sizes = [32, 1], strides = [1, 1]} : vector<32x8xf32> to vector<32x1xf32>
    %9 = vector.broadcast %4 : vector<32x1xf32> to vector<32x256xf32>
    %10 = arith.addf %1, %9 : vector<32x256xf32>
    %cst = arith.constant dense<0.000000e+00> : vector<256xf32>
    %11 = vector.multi_reduction <add>, %10, %cst [0] : vector<32x256xf32> to vector<256xf32>
    %12 = vector.shape_cast %11 : vector<256xf32> to vector<1x256xf32>
    %cst_5 = arith.constant 3.200000e+01 : f32
    %13 = vector.broadcast %cst_5 : f32 to vector<1x256xf32>
    %14 = arith.divf %12, %13 : vector<1x256xf32>
    %15 = arith.mulf %10, %10 : vector<32x256xf32>
    %cst_6 = arith.constant dense<0.000000e+00> : vector<256xf32>
    %16 = vector.multi_reduction <add>, %15, %cst_6 [0] : vector<32x256xf32> to vector<256xf32>
    %17 = vector.shape_cast %16 : vector<256xf32> to vector<1x256xf32>
    %cst_7 = arith.constant 3.200000e+01 : f32
    %18 = vector.broadcast %cst_7 : f32 to vector<1x256xf32>
    %19 = arith.divf %17, %18 : vector<1x256xf32>
    %20 = arith.mulf %14, %14 : vector<1x256xf32>
    %21 = arith.subf %19, %20 : vector<1x256xf32>
    %22 = vector.broadcast %14 : vector<1x256xf32> to vector<32x256xf32>
    %23 = arith.subf %10, %22 : vector<32x256xf32>
    %cst_8 = arith.constant 9.99999974E-6 : f32
    %24 = vector.broadcast %cst_8 : f32 to vector<1x256xf32>
    %25 = arith.addf %21, %24 : vector<1x256xf32>
    %26 = math.rsqrt %25 : vector<1x256xf32>
    %27 = vector.broadcast %26 : vector<1x256xf32> to vector<32x256xf32>
    %28 = arith.mulf %23, %27 : vector<32x256xf32>
    %29 = vector.broadcast %5 : vector<32x1xf32> to vector<32x256xf32>
    %30 = arith.mulf %28, %29 : vector<32x256xf32>
    %31 = vector.broadcast %6 : vector<32x1xf32> to vector<32x256xf32>
    %32 = arith.addf %30, %31 : vector<32x256xf32>
    %c0_9 = arith.constant 0 : index
    %c0_10 = arith.constant 0 : index
    %33 = vector.load %arg4[%c0_9, %c0_10] : memref<64x32xf32, #tpu.memory_space<vmem>>, vector<64x32xf32>
    %cst_11 = arith.constant dense<0.000000e+00> : vector<64x256xf32>
    %34 = tpu.matmul %33, %32, %cst_11 {dimension_numbers = #tpu.dot_dimension_numbers<[1], [0], [0], [1], [0, 0, 1, 1], [], []>} : vector<64x32xf32>, vector<32x256xf32>, vector<64x256xf32> -> vector<64x256xf32>
    %35 = vector.extract_strided_slice %34 {offsets = [0, 0], sizes = [32, 256], strides = [1, 1]} : vector<64x256xf32> to vector<32x256xf32>
    %36 = vector.broadcast %7 : vector<32x1xf32> to vector<32x256xf32>
    %37 = arith.addf %35, %36 : vector<32x256xf32>
    %38 = vector.extract_strided_slice %34 {offsets = [32, 0], sizes = [32, 256], strides = [1, 1]} : vector<64x256xf32> to vector<32x256xf32>
    %39 = vector.broadcast %8 : vector<32x1xf32> to vector<32x256xf32>
    %40 = arith.addf %38, %39 : vector<32x256xf32>
    %cst_12 = arith.constant 5.000000e-01 : f32
    %41 = vector.broadcast %cst_12 : f32 to vector<32x256xf32>
    %42 = arith.mulf %41, %40 : vector<32x256xf32>
    %cst_13 = arith.constant 0.707106769 : f32
    %43 = vector.broadcast %cst_13 : f32 to vector<32x256xf32>
    %44 = arith.mulf %40, %43 : vector<32x256xf32>
    %45 = math.erf %44 : vector<32x256xf32>
    %cst_14 = arith.constant 1.000000e+00 : f32
    %46 = vector.broadcast %cst_14 : f32 to vector<32x256xf32>
    %47 = arith.addf %46, %45 : vector<32x256xf32>
    %48 = arith.mulf %42, %47 : vector<32x256xf32>
    %49 = arith.mulf %37, %48 : vector<32x256xf32>
    %50 = arith.addf %10, %49 : vector<32x256xf32>
    %c0_15 = arith.constant 0 : index
    %c0_16 = arith.constant 0 : index
    %c0_17 = arith.constant 0 : index
    %51 = vector.load %arg5[%c0_15, %c0_16, %c0_17] : memref<1x32x256xf32, #tpu.memory_space<vmem>>, vector<1x32x256xf32>
    %52 = vector.shape_cast %51 : vector<1x32x256xf32> to vector<32x256xf32>
    %53 = vector.shape_cast %50 : vector<32x256xf32> to vector<1x32x256xf32>
    tpu.vector_store %arg5[%c0_15, %c0_16, %c0_17], %53 {strides = array<i32>} : memref<1x32x256xf32, #tpu.memory_space<vmem>>, vector<1x32x256xf32>,
    return
  }
  func.func @transform_0(%arg0: i32, %arg1: i32) -> (i32, i32, i32) {
    %c0_i32 = arith.constant 0 : i32
    %c0_i32_0 = arith.constant 0 : i32
    return %arg0, %c0_i32, %arg1 : i32, i32, i32
  }
  func.func @transform_1(%arg0: i32, %arg1: i32) -> (i32, i32, i32) {
    %c0_i32 = arith.constant 0 : i32
    %c0_i32_0 = arith.constant 0 : i32
    %c0_i32_1 = arith.constant 0 : i32
    return %arg0, %c0_i32, %c0_i32_0 : i32, i32, i32
  }
  func.func @transform_2(%arg0: i32, %arg1: i32) -> (i32, i32) {
    %c0_i32 = arith.constant 0 : i32
    %c0_i32_0 = arith.constant 0 : i32
    %c0_i32_1 = arith.constant 0 : i32
    return %c0_i32, %c0_i32_0 : i32, i32
  }
  func.func @transform_3(%arg0: i32, %arg1: i32) -> (i32, i32, i32) {
    %c0_i32 = arith.constant 0 : i32
    %c0_i32_0 = arith.constant 0 : i32
    return %arg0, %c0_i32, %arg1 : i32, i32, i32
  }
}

module attributes {stable_mosaic.version = 11 : i64} {
  func.func @_geglu_block_kernel(%arg0: i32, %arg1: i32, %arg2: memref<1x32x256xf32, #tpu.memory_space<vmem>>, %arg3: memref<1x32x8xf32, #tpu.memory_space<vmem>>, %arg4: memref<64x32xf32, #tpu.memory_space<vmem>>, %arg5: memref<1x32x256xf32, #tpu.memory_space<vmem>>) attributes {dimension_semantics = [#tpu.dimension_semantics<parallel>, #tpu.dimension_semantics<parallel>], iteration_bounds = array<i64: 2, 1>, scalar_prefetch = 0 : i64, scratch_operands = 0 : i64, tpu.core_type = #tpu.core_type<tc>, window_params = [{transform_indices = @transform_0, window_bounds = array<i64: 1, 32, 256>}, {transform_indices = @transform_1, window_bounds = array<i64: 1, 32, 8>}, {pipeline_mode = #tpu.pipeline_mode<synchronous>, transform_indices = @transform_2, window_bounds = array<i64: 64, 32>}, {transform_indices = @transform_3, window_bounds = array<i64: 1, 32, 256>}]} {
    %c0 = arith.constant 0 : index
    %c0_0 = arith.constant 0 : index
    %c0_1 = arith.constant 0 : index
    %0 = vector.load %arg2[%c0, %c0_0, %c0_1] : memref<1x32x256xf32, #tpu.memory_space<vmem>>, vector<1x32x256xf32>
    %1 = vector.shape_cast %0 : vector<1x32x256xf32> to vector<32x256xf32>
    %c0_2 = arith.constant 0 : index
    %c0_3 = arith.constant 0 : index
    %c0_4 = arith.constant 0 : index
    %2 = vector.load %arg3[%c0_2, %c0_3, %c0_4] : memref<1x32x8xf32, #tpu.memory_space<vmem>>, vector<1x32x8xf32>
    %3 = vector.shape_cast %2 : vector<1x32x8xf32> to vector<32x8xf32>
    %4 = vector.extract_strided_slice %3 {offsets = [0, 0], sizes = [32, 1], strides = [1, 1]} : vector<32x8xf32> to vector<32x1xf32>
    %5 = vector.extract_strided_slice %3 {offsets = [0, 1], sizes = [32, 1], strides = [1, 1]} : vector<32x8xf32> to vector<32x1xf32>
    %6 = vector.extract_strided_slice %3 {offsets = [0, 2], sizes = [32, 1], strides = [1, 1]} : vector<32x8xf32> to vector<32x1xf32>
    %7 = vector.extract_strided_slice %3 {offsets = [0, 3], sizes = [32, 1], strides = [1, 1]} : vector<32x8xf32> to vector<32x1xf32>
    %8 = vector.extract_strided_slice %3 {offsets = [0, 4], sizes = [32, 1], strides = [1, 1]} : vector<32x8xf32> to vector<32x1xf32>
    %9 = vector.broadcast %4 : vector<32x1xf32> to vector<32x256xf32>
    %10 = arith.addf %1, %9 : vector<32x256xf32>
    %cst = arith.constant dense<0.000000e+00> : vector<256xf32>
    %11 = vector.multi_reduction <add>, %10, %cst [0] : vector<32x256xf32> to vector<256xf32>
    %12 = vector.shape_cast %11 : vector<256xf32> to vector<1x256xf32>
    %cst_5 = arith.constant 3.200000e+01 : f32
    %13 = vector.broadcast %cst_5 : f32 to vector<1x256xf32>
    %14 = arith.divf %12, %13 : vector<1x256xf32>
    %15 = arith.mulf %10, %10 : vector<32x256xf32>
    %cst_6 = arith.constant dense<0.000000e+00> : vector<256xf32>
    %16 = vector.multi_reduction <add>, %15, %cst_6 [0] : vector<32x256xf32> to vector<256xf32>
    %17 = vector.shape_cast %16 : vector<256xf32> to vector<1x256xf32>
    %cst_7 = arith.constant 3.200000e+01 : f32
    %18 = vector.broadcast %cst_7 : f32 to vector<1x256xf32>
    %19 = arith.divf %17, %18 : vector<1x256xf32>
    %20 = arith.mulf %14, %14 : vector<1x256xf32>
    %21 = arith.subf %19, %20 : vector<1x256xf32>
    %22 = vector.broadcast %14 : vector<1x256xf32> to vector<32x256xf32>
    %23 = arith.subf %10, %22 : vector<32x256xf32>
    %cst_8 = arith.constant 9.99999974E-6 : f32
    %24 = vector.broadcast %cst_8 : f32 to vector<1x256xf32>
    %25 = arith.addf %21, %24 : vector<1x256xf32>
    %26 = math.rsqrt %25 : vector<1x256xf32>
    %27 = vector.broadcast %26 : vector<1x256xf32> to vector<32x256xf32>
    %28 = arith.mulf %23, %27 : vector<32x256xf32>
    %29 = vector.broadcast %5 : vector<32x1xf32> to vector<32x256xf32>
    %30 = arith.mulf %28, %29 : vector<32x256xf32>
    %31 = vector.broadcast %6 : vector<32x1xf32> to vector<32x256xf32>
    %32 = arith.addf %30, %31 : vector<32x256xf32>
    %c0_9 = arith.constant 0 : index
    %c0_10 = arith.constant 0 : index
    %33 = vector.load %arg4[%c0_9, %c0_10] : memref<64x32xf32, #tpu.memory_space<vmem>>, vector<64x32xf32>
    %cst_11 = arith.constant dense<0.000000e+00> : vector<64x256xf32>
    %34 = tpu.matmul %33, %32, %cst_11 {dimension_numbers = #tpu.dot_dimension_numbers<[1], [0], [0], [1], [0, 0, 1, 1], [], []>} : vector<64x32xf32>, vector<32x256xf32>, vector<64x256xf32> -> vector<64x256xf32>
    %35 = vector.extract_strided_slice %34 {offsets = [0, 0], sizes = [32, 256], strides = [1, 1]} : vector<64x256xf32> to vector<32x256xf32>
    %36 = vector.broadcast %7 : vector<32x1xf32> to vector<32x256xf32>
    %37 = arith.addf %35, %36 : vector<32x256xf32>
    %38 = vector.extract_strided_slice %34 {offsets = [32, 0], sizes = [32, 256], strides = [1, 1]} : vector<64x256xf32> to vector<32x256xf32>
    %39 = vector.broadcast %8 : vector<32x1xf32> to vector<32x256xf32>
    %40 = arith.addf %38, %39 : vector<32x256xf32>
    %cst_12 = arith.constant 5.000000e-01 : f32
    %41 = vector.broadcast %cst_12 : f32 to vector<32x256xf32>
    %42 = arith.mulf %41, %40 : vector<32x256xf32>
    %cst_13 = arith.constant 0.707106769 : f32
    %43 = vector.broadcast %cst_13 : f32 to vector<32x256xf32>
    %44 = arith.mulf %40, %43 : vector<32x256xf32>
    %45 = math.erf %44 : vector<32x256xf32>
    %cst_14 = arith.constant 1.000000e+00 : f32
    %46 = vector.broadcast %cst_14 : f32 to vector<32x256xf32>
    %47 = arith.addf %46, %45 : vector<32x256xf32>
    %48 = arith.mulf %42, %47 : vector<32x256xf32>
    %49 = arith.mulf %37, %48 : vector<32x256xf32>
    %50 = arith.addf %10, %49 : vector<32x256xf32>
    %c0_15 = arith.constant 0 : index
    %c0_16 = arith.constant 0 : index
    %c0_17 = arith.constant 0 : index
    %51 = vector.load %arg5[%c0_15, %c0_16, %c0_17] : memref<1x32x256xf32, #tpu.memory_space<vmem>>, vector<1x32x256xf32>
    %52 = vector.shape_cast %51 : vector<1x32x256xf32> to vector<32x256xf32>
    %53 = vector.shape_cast %50 : vector<32x256xf32> to vector<1x32x256xf32>
    tpu.vector_store %arg5[%c0_15, %c0_16, %c0_17], %53 {strides = array<i32>} : memref<1x32x256xf32, #tpu.memory_space<vmem>>, vector<1x32x256xf32>,
    return
  }
  func.func @transform_0(%arg0: i32, %arg1: i32) -> (i32, i32, i32) {
    %c0_i32 = arith.constant 0 : i32
    %c0_i32_0 = arith.constant 0 : i32
    return %arg0, %c0_i32, %arg1 : i32, i32, i32
  }
  func.func @transform_1(%arg0: i32, %arg1: i32) -> (i32, i32, i32) {
    %c0_i32 = arith.constant 0 : i32
    %c0_i32_0 = arith.constant 0 : i32
    %c0_i32_1 = arith.constant 0 : i32
    return %arg0, %c0_i32, %c0_i32_0 : i32, i32, i32
  }
  func.func @transform_2(%arg0: i32, %arg1: i32) -> (i32, i32) {
    %c0_i32 = arith.constant 0 : i32
    %c0_i32_0 = arith.constant 0 : i32
    %c0_i32_1 = arith.constant 0 : i32
    return %c0_i32, %c0_i32_0 : i32, i32
  }
  func.func @transform_3(%arg0: i32, %arg1: i32) -> (i32, i32, i32) {
    %c0_i32 = arith.constant 0 : i32
    %c0_i32_0 = arith.constant 0 : i32
    return %arg0, %c0_i32, %arg1 : i32, i32, i32
  }
}

</mosaic_0001>

<bundles_post_ra>
// kernel: tpu_custom_call.1
= control target key start
LH: loop header
LB: loop body
LE: loop exit
PB: predicated region body
PF: predicated region fallthrough
CT: control target
= control target key end

     0   :  { %8 = vsyncpa [#allocation3], 0  ;;  %s1228_s0 = inlined_call_operand.vmem [shape: f32[2,32,256], index: 0, kind: input, shape index: {}]   ;;  %s1229_s1 = inlined_call_operand.vmem [shape: f32[2,32,8], index: 1, kind: input, shape index: {}]   ;;  %s1230_s2 = inlined_call_operand.vmem [shape: f32[64,32], index: 2, kind: input, shape index: {}]   ;;  %s1231_s3 = inlined_call_operand.hbm [shape: f32[2,32,256], index: 3, kind: output, shape index: {}]  }
   0x1   :  { %10 = vsyncpa [#allocation3 + $0x1], 0  ;;  %s989_s12 = smov 0   ;;  %s991_s13 = smov 0  }
   0x2   :  { %s993_s14 = smov 0   ;;  %s995_s15 = smov 0  }
   0x3   :  { %s997_s16 = smov 0   ;;  %s999_s17 = smov 0  }
   0x4 LB: > { %s746_s18 = sadd.s32 4294967295, %s958_s17   ;;  %s747_s19 = sadd.s32 4294967294, %s958_s17   ;;  %s958_s17 = sphi %s999_s17, %s16_s17   ;;  %s954_s16 = sphi %s997_s16, %s1238_s16   ;;  %s950_s15 = sphi %s995_s15, %s1237_s15   ;;  %s946_s14 = sphi %s993_s14, %s1236_s14   ;;  %s942_s13 = sphi %s991_s13, %s1235_s13   ;;  %s938_s12 = sphi %s989_s12, %s1234_s12  }
   0x5   : > { %s28_s20 = sadd.s32 1, %s954_s16  ;;  %s112_s21 = sadd.s32 1, %s946_s14 }
   0x6   : > { %p30_p0 = scmp.ge.s32.totalorder %s28_s20, 2  ;;  %p122_p1 = scmp.ne.s32.totalorder %s946_s14, %s942_s13 }
   0x7   : > { %p123_p2 = scmp.eq.s32.totalorder %s746_s18, 1  ;;  %p128_p3 = scmp.ne.s32.totalorder %s942_s13, %s938_s12 }
   0x8   : > { %s1240_s20 = smov (%p30_p0, %s28_s20), 0  ;;  %p129_p5 = scmp.eq.s32.totalorder %s747_s19, 1 }
   0x9   : > { %p1029_p4 = por %p123_p2, %p122_p1  ;;  %s107_s23 = ssub.s32 %s954_s16, %s1240_s20 }
   0xa   : > { %p750_p6 = scmp.ge.s32.totalorder %s958_s17, 1  ;;  %p110_p7 = scmp.eq.s32.totalorder %s107_s23, 0 }
   0xb   : > { %p1036_p8 = por %p129_p5, %p128_p3  ;;  %p171_p9 = scmp.lt.s32.totalorder %s958_s17, 3 }
   0xc   : > { %s1042_s25 = scalar_select %p110_p7, %s946_s14, %s112_s21  }
   0xd   : > { %p172_p10 = pnand %p750_p6, %p171_p9 }
   0xe   : > { %p205_p11 = scmp.lt.s32.totalorder (!%p172_p10), %s950_s15, 1  ;;  %v960_v0 = vmov (!%p172_p10), 0   ;;  %v961_v5 = vmov (!%p172_p10), 1   ;;  %v962_v6 = vmov (!%p172_p10), 2   ;;  %v963_v7 = vmov (!%p172_p10), 0.0   ;;  %s771_s10 = sshll.u32 (!%p172_p10), %s950_s15, 10 }
   0xf   : > { %175 = sbr.rel (%p172_p10) target bundleno = 478 (0x1de), region = 32  ;;  %848 = vset.pattern.permute.xlu1 (!%p172_p10), %v960_v0  ;;  %847 = vset.pattern.permute.xlu0 (!%p172_p10), %v960_v0  ;;  %v964_v8 = vmov (!%p172_p10), 4   ;;  %v965_v9 = vmov (!%p172_p10), 3   ;;  %vm389_vm0 = vcmask (!%p172_p10), 261120   ;;  %s1173_s21 = scalar_lea.hbm (!%p172_p10), %s1231_s3, %s771_s10 }
  0x10   : > { %502 = vmatprep.mubr.f32.mxu1 (!%p172_p10), %v963_v7  ;;  %478 = vmatprep.mubr.f32.mxu0 (!%p172_p10), %v963_v7 }
  0x16   : > { %s1046_s26 = scalar_select %p205_p11, %s950_s15, 1 }
  0x18   : > { %s770_s27 = sshll.u32 %s1046_s26, 5  ;;  %s769_s4 = sshll.u32 %s1046_s26, 6 }
  0x19   : > { %s218_s30 = scalar_lea.vmem %s1229_s1, %s770_s27  ;;  %s212_s7 = scalar_lea.vmem %s1228_s0, %s769_s4 }
  0x1a   : > { %v230_v1 = vld [vmem:[%s218_s30 + $0x10] sm:$0xff]  ;;  %v228_v2 = vld [vmem:[%s218_s30] sm:$0xff]  ;;  %v231_v3 = vld [vmem:[%s218_s30 + $0x18] sm:$0xff]  ;;  %s966_s26 = smov [#allocation2]  }
  0x1b   : > { %244 = vperm.xlu1 %848, %v230_v1   ;;  %234 = vperm.xlu0 %847, %v228_v2   ;;  %v229_v4 = vld [vmem:[%s218_s30 + $0x8] sm:$0xff]  ;;  %v220_v12 = vld [vmem:[%s212_s7] sm:$0xff]  ;;  %v222_v14 = vld [vmem:[%s212_s7 + $0x10] sm:$0xff]  ;;  %s884_s27 = sshll.u32 %s966_s26, 4  ;;  %s885_s27 = int_to_ptr.vmem [resolvable:$false] %s884_s27 }
  0x1c   : > { %v221_v13 = vld [vmem:[%s212_s7 + $0x8] sm:$0xff]  ;;  %v223_v15 = vld [vmem:[%s212_s7 + $0x18] sm:$0xff]  ;;  %v224_v16 = vld [vmem:[%s212_s7 + $0x20] sm:$0xff]  ;;  %s886_s28 = scalar_lea.vmem %s885_s27, 2048 }
  0x1d   : > { %v225_v17 = vld [vmem:[%s212_s7 + $0x28] sm:$0xff]  ;;  %v226_v22 = vld [vmem:[%s212_s7 + $0x30] sm:$0xff]  ;;  %v227_v23 = vld [vmem:[%s212_s7 + $0x38] sm:$0xff]  ;;  %s201_s7 = sand.u32 1, %s942_s13  }
  0x1e   : > { %s751_s8 = sshll.u32 %s201_s7, 6  ;;  %s1182_s15 = scalar_lea.sflag [#allocation3], %s201_s7 }
  0x1f   : > { %249 = vperm.xlu1 %848, %v231_v3   ;;  %239 = vperm.xlu0 %847, %v229_v4   ;;  %s1153_s9 = scalar_lea.vmem [#allocation2], %s751_s8 }
  0x20   : > { %s655_s11 = sshll.u32 %s1153_s9, 4  ;;  %s1175_s11 = int_to_ptr.vmem [resolvable:$true] %s655_s11 }
  0x21   : > { %s880_s23 = scalar_lea.vmem %s1175_s11, 1024  ;;  %p887_p1 = scmp.lt.s32.totalorder %s1175_s11, %s885_s27 }
  0x22   : > { %p881_p12 = scmp.ne.s32.totalorder %s1175_s11, %s880_s23  ;;  %p888_p2 = scmp.lt.s32.totalorder %s886_s28, %s880_s23 }
  0x23   : > { %850 = vset.pattern.permute.xlu1 %v961_v5  ;;  %849 = vset.pattern.permute.xlu0 %v961_v5 }
  0x24   : > { %338 = vperm.xlu1 %850, %v229_v4   ;;  %334 = vperm.xlu0 %849, %v228_v2   ;;  %p882_p13 = pnand %p881_p12, %p1029_p4  ;;  %p889_p3 = por %p888_p2, %p887_p1 }
  0x26   : > { %p883_p0 = pneg %p882_p13 }
  0x28   : > { %851 = vset.pattern.permute.xlu1 %v962_v6  ;;  %852 = vset.pattern.permute.xlu0 %v962_v6  ;;  %p890_p5 = pnand %p889_p3, %p883_p0 }
  0x29   : > { %358 = vperm.xlu1 %851, %v228_v2   ;;  %362 = vperm.xlu0 %852, %v229_v4  }
  0x2d   : > { %853 = vset.pattern.permute.xlu1 %v961_v5  ;;  %366 = vperm.xlu0 %852, %v230_v1  }
  0x2e   : > { %342 = vperm.xlu1 %853, %v230_v1  }
  0x31   : > { %855 = vset.pattern.permute.xlu0 %v964_v8 }
  0x32   : > { %346 = vperm.xlu1 %853, %v231_v3   ;;  %552 = vperm.xlu0 %855, %v228_v2  }
  0x36   : > { %854 = vset.pattern.permute.xlu1 %v962_v6  ;;  %564 = vperm.xlu0 %855, %v231_v3  }
  0x37   : > { %370 = vperm.xlu1 %854, %v231_v3  }
  0x3a   : > { %858 = vset.pattern.permute.xlu0 %v965_v9 }
  0x3b   : > { %856 = vset.pattern.permute.xlu1 %v964_v8  ;;  %532 = vperm.xlu0 %858, %v229_v4  }
  0x3c   : > { %556 = vperm.xlu1 %856, %v229_v4  }
  0x3f   : > { %859 = vset.pattern.permute.xlu0 %v964_v8 }
  0x40   : > { %560 = vperm.xlu1 %856, %v230_v1  }
  0x44   : > { %857 = vset.pattern.permute.xlu1 %v965_v9 }
  0x45   : > { %528 = vperm.xlu1 %857, %v228_v2  }
  0x49   : > { %536 = vperm.xlu1 %857, %v230_v1  }
  0x4d   : > { %540 = vperm.xlu1 %857, %v231_v3  }
  0x9a   : > { %v245_v10 = vpop.permute.xlu1 %244  ;;  %v235_v11 = vpop.permute.xlu0 %234 }
  0x9b   : > { %v1058_v18 = vadd.f32 %v235_v11, %v220_v12  ;;  %v1060_v19 = vadd.f32 %v235_v11, %v221_v13  ;;  %v1066_v26 = vadd.f32 %v245_v10, %v224_v16  ;;  %v1068_v27 = vadd.f32 %v245_v10, %v225_v17 }
  0x9d   : > { %v281_v28 = vmul.f32 %v1058_v18, %v1058_v18  ;;  %v282_v29 = vmul.f32 %v1060_v19, %v1060_v19  ;;  %v285_v38 = vmul.f32 %v1066_v26, %v1066_v26  ;;  %v286_v39 = vmul.f32 %v1068_v27, %v1068_v27 }
  0x9e   : > { %v240_v20 = vpop.permute.xlu0 %239  ;;  %v250_v21 = vpop.permute.xlu1 %249 }
  0x9f   : > { %v1062_v24 = vadd.f32 %v240_v20, %v222_v14  ;;  %v1064_v25 = vadd.f32 %v240_v20, %v223_v15  ;;  %v1078_v32 = vadd.f32 %v250_v21, %v226_v22  ;;  %v1080_v33 = vadd.f32 %v250_v21, %v227_v23 }
  0xa1   : > { %v260_v30 = vadd.f32 %v1062_v24, %v1058_v18  ;;  %v269_v31 = vadd.f32 %v1064_v25, %v1060_v19  ;;  %v283_v34 = vmul.f32 %v1062_v24, %v1062_v24  ;;  %v284_v35 = vmul.f32 %v1064_v25, %v1064_v25 }
  0xa2   : > { %v287_v44 = vmul.f32 %v1078_v32, %v1078_v32  ;;  %v288_v45 = vmul.f32 %v1080_v33, %v1080_v33 }
  0xa3   : > { %v261_v36 = vadd.f32 %v260_v30, %v1066_v26  ;;  %v270_v37 = vadd.f32 %v269_v31, %v1068_v27  ;;  %v289_v40 = vadd.f32 %v283_v34, %v281_v28  ;;  %v298_v41 = vadd.f32 %v284_v35, %v282_v29  ;;  %v339_v4 = vpop.permute.xlu1 %338  ;;  %v335_v30 = vpop.permute.xlu0 %334 }
  0xa5   : > { %v262_v42 = vadd.f32 %v261_v36, %v1078_v32  ;;  %v271_v43 = vadd.f32 %v270_v37, %v1080_v33  ;;  %v290_v46 = vadd.f32 %v289_v40, %v285_v38  ;;  %v299_v47 = vadd.f32 %v298_v41, %v286_v39 }
  0xa7   : > { %v263_v48 = vrot.slane %v262_v42, 4  ;;  %v272_v49 = vrot.slane %v271_v43, 4  ;;  %v291_v50 = vadd.f32 %v290_v46, %v287_v44  ;;  %v300_v51 = vadd.f32 %v299_v47, %v288_v45 }
  0xa8   : > { %v359_v20 = vpop.permute.xlu1 %358  ;;  %v363_v34 = vpop.permute.xlu0 %362 }
  0xa9   : > { %v264_v52 = vadd.f32 %v263_v48, %v262_v42  ;;  %v273_v53 = vadd.f32 %v272_v49, %v271_v43  ;;  %v292_v54 = vrot.slane %v291_v50, 4  ;;  %v301_v55 = vrot.slane %v300_v51, 4 }
  0xab   : > { %v265_v56 = vrot.slane %v264_v52, 2  ;;  %v274_v57 = vrot.slane %v273_v53, 2  ;;  %v293_v58 = vadd.f32 %v292_v54, %v291_v50  ;;  %v302_v59 = vadd.f32 %v301_v55, %v300_v51 }
  0xad   : > { %v266_v60 = vadd.f32 %v265_v56, %v264_v52  ;;  %v275_v61 = vadd.f32 %v274_v57, %v273_v53  ;;  %v294_v62 = vrot.slane %v293_v58, 2  ;;  %v303_v63 = vrot.slane %v302_v59, 2  ;;  %v343_v29 = vpop.permute.xlu1 %342  ;;  %v367_v56 = vpop.permute.xlu0 %366 }
  0xaf   : > { %v267_v0 = vrot.slane %v266_v60, 1  ;;  %v276_v1 = vrot.slane %v275_v61, 1  ;;  %v295_v2 = vadd.f32 %v294_v62, %v293_v58  ;;  %v304_v3 = vadd.f32 %v303_v63, %v302_v59 }
  0xb1   : > { %v268_v5 = vadd.f32 %v267_v0, %v266_v60  ;;  %v277_v6 = vadd.f32 %v276_v1, %v275_v61  ;;  %v296_v8 = vrot.slane %v295_v2, 1  ;;  %v305_v9 = vrot.slane %v304_v3, 1  ;;  %v347_v31 = vpop.permute.xlu1 %346 }
  0xb3   : > { %v279_v10 = vmul.f32 0.03125, %v268_v5  ;;  %v280_v11 = vmul.f32 0.03125, %v277_v6  ;;  %v297_v12 = vadd.f32 %v296_v8, %v295_v2  ;;  %v306_v13 = vadd.f32 %v305_v9, %v304_v3 }
  0xb5   : > { %v309_v14 = vmul.f32 %v279_v10, %v279_v10  ;;  %v310_v15 = vmul.f32 %v280_v11, %v280_v11  ;;  %v307_v16 = vmul.f32 0.03125, %v297_v12  ;;  %v308_v17 = vmul.f32 0.03125, %v306_v13  ;;  %v385_v12 = vld [vmem:[%s1230_s2 + $0x20] sm:$0xff] }
  0xb6   : > { %v315_v35 = vsub.f32 %v1062_v24, %v279_v10  ;;  %v317_v36 = vsub.f32 %v1066_v26, %v279_v10  ;;  %v313_v37 = vsub.f32 %v1058_v18, %v279_v10  ;;  %v319_v38 = vsub.f32 %v1078_v32, %v279_v10  ;;  %v371_v55 = vpop.permute.xlu1 %370  ;;  %v381_v13 = vld [vmem:[%s1230_s2] sm:$0xff] }
  0xb7   : > { %v311_v21 = vsub.f32 %v307_v16, %v309_v14  ;;  %v312_v22 = vsub.f32 %v308_v17, %v310_v15  ;;  %v316_v40 = vsub.f32 %v1064_v25, %v280_v11  ;;  %v318_v41 = vsub.f32 %v1068_v27, %v280_v11  ;;  %v386_v14 = vld [vmem:[%s1230_s2 + $0x28] sm:$0xff]  ;;  %v387_v16 = vld [vmem:[%s1230_s2 + $0x30] sm:$0xff] }
  0xb8   : > { %v314_v42 = vsub.f32 %v1060_v19, %v280_v11  ;;  %v320_v43 = vsub.f32 %v1080_v33, %v280_v11  ;;  %v382_v15 = vld [vmem:[%s1230_s2 + $0x8] sm:$0xff]  ;;  %v383_v17 = vld [vmem:[%s1230_s2 + $0x10] sm:$0xff] }
  0xb9   : > { %v321_v23 = vadd.f32 1e-05, %v311_v21  ;;  %v322_v28 = vadd.f32 1e-05, %v312_v22  ;;  %v384_v21 = vld [vmem:[%s1230_s2 + $0x18] sm:$0xff]  ;;  %v553_v22 = vpop.permute.xlu0 %552 }
  0xbb   : > { %860 = vrsqrt.f32 %v321_v23  ;;  %v557_v23 = vpop.permute.xlu1 %556 }
  0xbc   : > { %862 = vrsqrt.f32 %v322_v28 }
  0xc5   : > { %v861_v39 = vpop.eup %860 }
  0xc6   : > { %v863_v44 = vpop.eup %862  ;;  %v327_v45 = vmul.f32 %v861_v39, %v315_v35  ;;  %v329_v46 = vmul.f32 %v861_v39, %v317_v36  ;;  %v325_v47 = vmul.f32 %v861_v39, %v313_v37  ;;  %v331_v48 = vmul.f32 %v861_v39, %v319_v38 }
  0xc7   : > { %v328_v49 = vmul.f32 %v863_v44, %v316_v40  ;;  %v330_v50 = vmul.f32 %v863_v44, %v318_v41  ;;  %v326_v51 = vmul.f32 %v863_v44, %v314_v42  ;;  %v332_v52 = vmul.f32 %v863_v44, %v320_v43  ;;  %v561_v43 = vpop.permute.xlu1 %560 }
  0xc8   : > { %v351_v53 = vmul.f32 %v339_v4, %v327_v45  ;;  %v349_v54 = vmul.f32 %v335_v30, %v325_v47  ;;  %v353_v61 = vmul.f32 %v343_v29, %v329_v46  ;;  %v355_v62 = vmul.f32 %v347_v31, %v331_v48 }
  0xc9   : > { %v352_v57 = vmul.f32 %v339_v4, %v328_v49  ;;  %v354_v58 = vmul.f32 %v343_v29, %v330_v50  ;;  %v350_v59 = vmul.f32 %v335_v30, %v326_v51  ;;  %v356_v60 = vmul.f32 %v347_v31, %v332_v52 }
  0xca   : > { %v375_v63 = vadd.f32 %v363_v34, %v351_v53  ;;  %v373_v0 = vadd.f32 %v359_v20, %v349_v54  ;;  %v379_v9 = vadd.f32 %v371_v55, %v355_v62  ;;  %v377_v10 = vadd.f32 %v367_v56, %v353_v61  ;;  %v565_v53 = vpop.permute.xlu0 %564 }
  0xcb   : > { %v376_v1 = vadd.f32 %v363_v34, %v352_v57  ;;  %v380_v2 = vadd.f32 %v371_v55, %v356_v60  ;;  %v378_v3 = vadd.f32 %v367_v56, %v354_v58  ;;  %v374_v5 = vadd.f32 %v359_v20, %v350_v59  ;;  %v388_v20 = vld [vmem:[%s1230_s2 + $0x38] sm:$0xff] }
  0xcc   : > { %v774_v6 = vpack.c.bf16 %v375_v63, %v373_v0  ;;  %v778_v4 = vpack.c.bf16 %v379_v9, %v377_v10  ;;  %v529_v63 = vpop.permute.xlu1 %528 }
  0xcd   : > { %v772_v8 = vpack.c.bf16 %v376_v1, %v374_v5  ;;  %v776_v11 = vpack.c.bf16 %v380_v2, %v378_v3 }
  0xce   : > { %v533_v10 = vpop.permute.xlu0 %532 }
  0xcf   : > { %773 = vmatprep.subr.bf16.mxu0 %v772_v8  ;;  %780 = vmatprep.subr.bf16.mxu1 %v772_v8 }
  0xd0   : > { %775 = vmatpush1.bf16.msra.mxu0 %v774_v6  ;;  %782 = vmatpush1.bf16.msra.mxu1 %v774_v6 }
  0xd1   : > { %777 = vmatprep.subr.bf16.mxu0 %v776_v11  ;;  %781 = vmatprep.subr.bf16.mxu1 %v776_v11 }
  0xd4   : > { %779 = vmatpush1.bf16.msra.mxu0 %v778_v4  ;;  %783 = vmatpush1.bf16.msra.mxu1 %v778_v4 }
  0xd7   : > { %760 = vmatmul.mubr.msk.f32.vlgmr.msra.gmra.mrb[0].mxu1 %vm389_vm0, %v385_v12  ;;  %756 = vmatmul.mubr.msk.f32.vlgmr.msra.gmra.mrb[0].mxu0 %vm389_vm0, %v381_v13 }
  0xd8   : > { %508 = vmatprep.mubr.f32.mxu1 %v963_v7  ;;  %484 = vmatprep.mubr.f32.mxu0 %v963_v7 }
  0xdb   : > { %761 = vmatmul.mubr.msk.f32.gmra.mrb[2].mxu1 %vm389_vm0, %v386_v14  ;;  %757 = vmatmul.mubr.msk.f32.gmra.mrb[2].mxu0 %vm389_vm0, %v382_v15 }
  0xdc   : > { %514 = vmatprep.mubr.f32.mxu1 %v963_v7  ;;  %490 = vmatprep.mubr.f32.mxu0 %v963_v7 }
  0xdf   : > { %762 = vmatmul.mubr.msk.f32.gmra.mrb[4].mxu1 %vm389_vm0, %v387_v16  ;;  %758 = vmatmul.mubr.msk.f32.gmra.mrb[4].mxu0 %vm389_vm0, %v383_v17 }
  0xe0   : > { %520 = vmatprep.mubr.f32.mxu1 %v963_v7  ;;  %496 = vmatprep.mubr.f32.mxu0 %v963_v7 }
  0xe3   : > { %763 = vmatmul.mubr.msk.f32.gmra.mrb[6].mxu1 %vm389_vm0, %v388_v20  ;;  %759 = vmatmul.mubr.msk.f32.gmra.mrb[6].mxu0 %vm389_vm0, %v384_v21 }
 0x1aa   : > { %v504_v28 = vpop.f32.mrb[0].mxu1  ;;  %v480_v29 = vpop.f32.mrb[0].mxu0 }
 0x1ab   : > { %v567_v30 = vadd.f32 %v553_v22, %v504_v28  ;;  %v506_v31 = vpop.f32.mrb[1].mxu1  ;;  %v482_v34 = vpop.f32.mrb[1].mxu0  ;;  %v543_v5 = vadd.f32 %v529_v63, %v480_v29 }
 0x1ac   : > { %v568_v35 = vadd.f32 %v553_v22, %v506_v31  ;;  %v544_v9 = vadd.f32 %v529_v63, %v482_v34 }
 0x1ad   : > { %v583_v36 = vmul.f32 0.70710677, %v567_v30  ;;  %v575_v1 = vmul.f32 0.5, %v567_v30 }
 0x1ae   : > { %v584_v37 = vmul.f32 0.70710677, %v568_v35  ;;  %v510_v38 = vpop.f32.mrb[2].mxu1  ;;  %v486_v7 = vpop.f32.mrb[2].mxu0  ;;  %v576_v6 = vmul.f32 0.5, %v568_v35 }
 0x1af   : > { %864 = verf.f32 %v583_v36  ;;  %v569_v39 = vadd.f32 %v557_v23, %v510_v38  ;;  %v512_v40 = vpop.f32.mrb[3].mxu1  ;;  %v488_v41 = vpop.f32.mrb[3].mxu0  ;;  %v545_v17 = vadd.f32 %v533_v10, %v486_v7 }
 0x1b0   : > { %866 = verf.f32 %v584_v37  ;;  %v570_v42 = vadd.f32 %v557_v23, %v512_v40  ;;  %v537_v23 = vpop.permute.xlu1 %536  ;;  %v546_v28 = vadd.f32 %v533_v10, %v488_v41 }
 0x1b1   : > { %v585_v44 = vmul.f32 0.70710677, %v569_v39  ;;  %v577_v14 = vmul.f32 0.5, %v569_v39 }
 0x1b2   : > { %v586_v45 = vmul.f32 0.70710677, %v570_v42  ;;  %v516_v46 = vpop.f32.mrb[4].mxu1  ;;  %v492_v47 = vpop.f32.mrb[4].mxu0  ;;  %v578_v20 = vmul.f32 0.5, %v570_v42 }
 0x1b3   : > { %868 = verf.f32 %v585_v44  ;;  %v571_v48 = vadd.f32 %v561_v43, %v516_v46  ;;  %v518_v49 = vpop.f32.mrb[5].mxu1  ;;  %v494_v50 = vpop.f32.mrb[5].mxu0 }
 0x1b4   : > { %870 = verf.f32 %v586_v45  ;;  %v572_v51 = vadd.f32 %v561_v43, %v518_v49  ;;  %v548_v44 = vadd.f32 %v537_v23, %v494_v50 }
 0x1b5   : > { %v587_v52 = vmul.f32 0.70710677, %v571_v48  ;;  %v579_v37 = vmul.f32 0.5, %v571_v48  ;;  %v541_v48 = vpop.permute.xlu1 %540 }
 0x1b6   : > { %v588_v54 = vmul.f32 0.70710677, %v572_v51  ;;  %v522_v55 = vpop.f32.mrb[6].mxu1  ;;  %v1144_v56 = vpop.f32.mrb[6].mxu0  ;;  %v580_v39 = vmul.f32 0.5, %v572_v51 }
 0x1b7   : > { %872 = verf.f32 %v587_v52  ;;  %v573_v57 = vadd.f32 %v565_v53, %v522_v55  ;;  %v524_v58 = vpop.f32.mrb[7].mxu1  ;;  %v1146_v59 = vpop.f32.mrb[7].mxu0  ;;  %v549_v50 = vadd.f32 %v541_v48, %v1144_v56 }
 0x1b8   : > { %874 = verf.f32 %v588_v54  ;;  %v574_v60 = vadd.f32 %v565_v53, %v524_v58 }
 0x1b9   : > { %v865_v61 = vpop.eup %864  ;;  %v589_v62 = vmul.f32 0.70710677, %v573_v57  ;;  %v581_v52 = vmul.f32 0.5, %v573_v57  ;;  %v550_v57 = vadd.f32 %v541_v48, %v1146_v59 }
 0x1ba   : > { %v867_v0 = vpop.eup %866  ;;  %v599_v2 = vadd.f32 1.0, %v865_v61  ;;  %v590_v3 = vmul.f32 0.70710677, %v574_v60 }
 0x1bb   : > { %v600_v8 = vadd.f32 1.0, %v867_v0  ;;  %876 = verf.f32 %v589_v62 }
 0x1bc   : > { %878 = verf.f32 %v590_v3  ;;  %v607_v11 = vmul.f32 %v599_v2, %v575_v1 }
 0x1bd   : > { %v869_v4 = vpop.eup %868  ;;  %v608_v12 = vmul.f32 %v600_v8, %v576_v6 }
 0x1be   : > { %v871_v13 = vpop.eup %870  ;;  %v601_v15 = vadd.f32 1.0, %v869_v4  ;;  %v615_v16 = vmul.f32 %v607_v11, %v543_v5 }
 0x1bf   : > { %v602_v21 = vadd.f32 1.0, %v871_v13  ;;  %v616_v22 = vmul.f32 %v608_v12, %v544_v9 }
 0x1c0   : > { %v623_v29 = vadd.f32 %v615_v16, %v1058_v18  ;;  %v609_v30 = vmul.f32 %v601_v15, %v577_v14  ;;  %v547_v18 = vadd.f32 %v537_v23, %v492_v47  ;;  %v582_v47 = vmul.f32 0.5, %v574_v60 }
 0x1c1   : > { %v873_v31 = vpop.eup %872  ;;  %v624_v34 = vadd.f32 %v616_v22, %v1060_v19  ;;  %v610_v35 = vmul.f32 %v602_v21, %v578_v20 }
 0x1c2   : > { %v875_v36 = vpop.eup %874  ;;  %v603_v38 = vadd.f32 1.0, %v873_v31  ;;  %631 = vst [vmem:[%s1153_s9] sm:$0xff] %v623_v29  ;;  %v617_v7 = vmul.f32 %v609_v30, %v545_v17 }
 0x1c3   : > { %v604_v40 = vadd.f32 1.0, %v875_v36  ;;  %632 = vst [vmem:[%s1153_s9 + $0x8] sm:$0xff] %v624_v34  ;;  %v618_v41 = vmul.f32 %v610_v35, %v546_v28 }
 0x1c4   : > { %v611_v42 = vmul.f32 %v603_v38, %v579_v37  ;;  %v625_v19 = vadd.f32 %v617_v7, %v1062_v24 }
 0x1c5   : > { %v877_v43 = vpop.eup %876  ;;  %v612_v45 = vmul.f32 %v604_v40, %v580_v39  ;;  %v626_v46 = vadd.f32 %v618_v41, %v1064_v25 }
 0x1c6   : > { %v879_v49 = vpop.eup %878  ;;  %v605_v51 = vadd.f32 1.0, %v877_v43  ;;  %v619_v53 = vmul.f32 %v611_v42, %v547_v18  ;;  %633 = vst [vmem:[%s1153_s9 + $0x10] sm:$0xff] %v625_v19 }
 0x1c7   : > { %v606_v54 = vadd.f32 1.0, %v879_v49  ;;  %v620_v55 = vmul.f32 %v612_v45, %v548_v44  ;;  %634 = vst [vmem:[%s1153_s9 + $0x18] sm:$0xff] %v626_v46 }
 0x1c8   : > { %v627_v24 = vadd.f32 %v619_v53, %v1066_v26  ;;  %v613_v25 = vmul.f32 %v605_v51, %v581_v52 }
 0x1c9   : > { %v628_v58 = vadd.f32 %v620_v55, %v1068_v27  ;;  %v614_v61 = vmul.f32 %v606_v54, %v582_v47 }
 0x1ca   : > { %635 = vst [vmem:[%s1153_s9 + $0x20] sm:$0xff] %v627_v24  ;;  %v621_v60 = vmul.f32 %v613_v25, %v549_v50 }
 0x1cb   : > { %636 = vst [vmem:[%s1153_s9 + $0x28] sm:$0xff] %v628_v58  ;;  %v622_v62 = vmul.f32 %v614_v61, %v550_v57 }
 0x1cc   : > { %v629_v26 = vadd.f32 %v621_v60, %v1078_v32 }
 0x1cd   : > { %v630_v27 = vadd.f32 %v622_v62, %v1080_v33 }
 0x1ce   : > { %637 = vst [vmem:[%s1153_s9 + $0x30] sm:$0xff] %v629_v26 }
 0x1cf   : > { %638 = vst [vmem:[%s1153_s9 + $0x38] sm:$0xff] %v630_v27 }
 0x1d0   : > { %893 = shalt.err (!%p890_p5)
}
 0x1d1   : > { %s894_s29 = scalar_lea.hbm %s1173_s21, 1024  ;;  %s898_s5 = scalar_lea.hbm %s1231_s3, 2048 }
 0x1d2   : > { %p895_p6 = scmp.ne.s32.totalorder %s1173_s21, %s894_s29  ;;  %p899_p10 = scmp.lt.u32.totalorder %s1173_s21, %s1231_s3 }
 0x1d3   : > { %p900_p11 = scmp.lt.u32.totalorder %s898_s5, %s894_s29  ;;  %p902_p13 = scmp.lt.u32.totalorder %s894_s29, %s1173_s21 }
 0x1d4   : > { %p896_p7 = pnand %p895_p6, %p1029_p4 }
 0x1d5   : > { %p901_p12 = por %p900_p11, %p899_p10 }
 0x1d6   : > { %p897_p9 = pneg %p896_p7 }
 0x1d7   : > { %p903_p0 = por %p902_p13, %p901_p12 }
 0x1d9   : > { %p904_p1 = pnand %p903_p0, %p897_p9 }
 0x1db   : > { %907 = shalt.err (!%p904_p1)
}
 0x1dc   : > { %s967_s8 = smov 256   ;;  %s968_s9 = smov 16  }
 0x1dd   : > { %784 = dma.vmem_to_hbm [thread:$0]  (%p1029_p4), %s1175_s11, 1024, %s1173_s21, %s1182_s15, %s967_s8, %s967_s8, %s968_s9  }
 0x1de PF: > { %p790_p2 = scmp.ge.s32.totalorder %s958_s17, 2  ;;  %s670_s10 = sand.u32 1, %s938_s12  }
 0x1df   : > { %s671_s18 = scalar_lea.sflag [#allocation3], %s670_s10 }
 0x1e0   : > { %p787_p3 = pnand %p790_p2, %p1036_p8 }
 0x1e2   : > { %933 = dma.done.wait (!%p787_p3), %s671_s18, 1024  }
 0x1e3   : > { %935 = vsyncadd (!%p787_p3), %s671_s18, 4294966272  ;;  %s16_s17 = sadd.s32 1, %s958_s17   ;;  %s1234_s12 = smov %s942_s13 }
 0x1e4   : > { %p13_p5 = scmp.ge.s32.totalorder %s16_s17, 4   ;;  %s1235_s13 = smov %s946_s14 }
 0x1e5   : > { %s1236_s14 = smov %s1042_s25  ;;  %s1237_s15 = smov %s954_s16 }
 0x1e6   : > { %s1238_s16 = smov %s1240_s20  ;;  %15 = sbr.rel (!%p13_p5) target bundleno = 4 (0x4), region = 70 }
 0x1ed   :  { %676 = vsyncpa [#allocation3], 1 }
 0x1ee   :  { %678 = vsyncpa [#allocation3 + $0x1], 1 }

// kernel: tpu_custom_call.1
= control target key start
LH: loop header
LB: loop body
LE: loop exit
PB: predicated region body
PF: predicated region fallthrough
CT: control target
= control target key end

     0   :  { %8 = vsyncpa [#allocation3], 0  ;;  %s1228_s0 = inlined_call_operand.vmem [shape: f32[2,32,256], index: 0, kind: input, shape index: {}]   ;;  %s1229_s1 = inlined_call_operand.vmem [shape: f32[2,32,8], index: 1, kind: input, shape index: {}]   ;;  %s1230_s2 = inlined_call_operand.vmem [shape: f32[64,32], index: 2, kind: input, shape index: {}]   ;;  %s1231_s3 = inlined_call_operand.hbm [shape: f32[2,32,256], index: 3, kind: output, shape index: {}]  }
   0x1   :  { %10 = vsyncpa [#allocation3 + $0x1], 0  ;;  %s989_s12 = smov 0   ;;  %s991_s13 = smov 0  }
   0x2   :  { %s993_s14 = smov 0   ;;  %s995_s15 = smov 0  }
   0x3   :  { %s997_s16 = smov 0   ;;  %s999_s17 = smov 0  }
   0x4 LB: > { %s746_s18 = sadd.s32 4294967295, %s958_s17   ;;  %s747_s19 = sadd.s32 4294967294, %s958_s17   ;;  %s958_s17 = sphi %s999_s17, %s16_s17   ;;  %s954_s16 = sphi %s997_s16, %s1238_s16   ;;  %s950_s15 = sphi %s995_s15, %s1237_s15   ;;  %s946_s14 = sphi %s993_s14, %s1236_s14   ;;  %s942_s13 = sphi %s991_s13, %s1235_s13   ;;  %s938_s12 = sphi %s989_s12, %s1234_s12  }
   0x5   : > { %s28_s20 = sadd.s32 1, %s954_s16  ;;  %s112_s21 = sadd.s32 1, %s946_s14 }
   0x6   : > { %p30_p0 = scmp.ge.s32.totalorder %s28_s20, 2  ;;  %p122_p1 = scmp.ne.s32.totalorder %s946_s14, %s942_s13 }
   0x7   : > { %p123_p2 = scmp.eq.s32.totalorder %s746_s18, 1  ;;  %p128_p3 = scmp.ne.s32.totalorder %s942_s13, %s938_s12 }
   0x8   : > { %s1240_s20 = smov (%p30_p0, %s28_s20), 0  ;;  %p129_p5 = scmp.eq.s32.totalorder %s747_s19, 1 }
   0x9   : > { %p1029_p4 = por %p123_p2, %p122_p1  ;;  %s107_s23 = ssub.s32 %s954_s16, %s1240_s20 }
   0xa   : > { %p750_p6 = scmp.ge.s32.totalorder %s958_s17, 1  ;;  %p110_p7 = scmp.eq.s32.totalorder %s107_s23, 0 }
   0xb   : > { %p1036_p8 = por %p129_p5, %p128_p3  ;;  %p171_p9 = scmp.lt.s32.totalorder %s958_s17, 3 }
   0xc   : > { %s1042_s25 = scalar_select %p110_p7, %s946_s14, %s112_s21  }
   0xd   : > { %p172_p10 = pnand %p750_p6, %p171_p9 }
   0xe   : > { %p205_p11 = scmp.lt.s32.totalorder (!%p172_p10), %s950_s15, 1  ;;  %v960_v0 = vmov (!%p172_p10), 0   ;;  %v961_v5 = vmov (!%p172_p10), 1   ;;  %v962_v6 = vmov (!%p172_p10), 2   ;;  %v963_v7 = vmov (!%p172_p10), 0.0   ;;  %s771_s10 = sshll.u32 (!%p172_p10), %s950_s15, 10 }
   0xf   : > { %175 = sbr.rel (%p172_p10) target bundleno = 478 (0x1de), region = 32  ;;  %848 = vset.pattern.permute.xlu1 (!%p172_p10), %v960_v0  ;;  %847 = vset.pattern.permute.xlu0 (!%p172_p10), %v960_v0  ;;  %v964_v8 = vmov (!%p172_p10), 4   ;;  %v965_v9 = vmov (!%p172_p10), 3   ;;  %vm389_vm0 = vcmask (!%p172_p10), 261120   ;;  %s1173_s21 = scalar_lea.hbm (!%p172_p10), %s1231_s3, %s771_s10 }
  0x10   : > { %502 = vmatprep.mubr.f32.mxu1 (!%p172_p10), %v963_v7  ;;  %478 = vmatprep.mubr.f32.mxu0 (!%p172_p10), %v963_v7 }
  0x16   : > { %s1046_s26 = scalar_select %p205_p11, %s950_s15, 1 }
  0x18   : > { %s770_s27 = sshll.u32 %s1046_s26, 5  ;;  %s769_s4 = sshll.u32 %s1046_s26, 6 }
  0x19   : > { %s218_s30 = scalar_lea.vmem %s1229_s1, %s770_s27  ;;  %s212_s7 = scalar_lea.vmem %s1228_s0, %s769_s4 }
  0x1a   : > { %v230_v1 = vld [vmem:[%s218_s30 + $0x10] sm:$0xff]  ;;  %v228_v2 = vld [vmem:[%s218_s30] sm:$0xff]  ;;  %v231_v3 = vld [vmem:[%s218_s30 + $0x18] sm:$0xff]  ;;  %s966_s26 = smov [#allocation2]  }
  0x1b   : > { %244 = vperm.xlu1 %848, %v230_v1   ;;  %234 = vperm.xlu0 %847, %v228_v2   ;;  %v229_v4 = vld [vmem:[%s218_s30 + $0x8] sm:$0xff]  ;;  %v220_v12 = vld [vmem:[%s212_s7] sm:$0xff]  ;;  %v222_v14 = vld [vmem:[%s212_s7 + $0x10] sm:$0xff]  ;;  %s884_s27 = sshll.u32 %s966_s26, 4  ;;  %s885_s27 = int_to_ptr.vmem [resolvable:$false] %s884_s27 }
  0x1c   : > { %v221_v13 = vld [vmem:[%s212_s7 + $0x8] sm:$0xff]  ;;  %v223_v15 = vld [vmem:[%s212_s7 + $0x18] sm:$0xff]  ;;  %v224_v16 = vld [vmem:[%s212_s7 + $0x20] sm:$0xff]  ;;  %s886_s28 = scalar_lea.vmem %s885_s27, 2048 }
  0x1d   : > { %v225_v17 = vld [vmem:[%s212_s7 + $0x28] sm:$0xff]  ;;  %v226_v22 = vld [vmem:[%s212_s7 + $0x30] sm:$0xff]  ;;  %v227_v23 = vld [vmem:[%s212_s7 + $0x38] sm:$0xff]  ;;  %s201_s7 = sand.u32 1, %s942_s13  }
  0x1e   : > { %s751_s8 = sshll.u32 %s201_s7, 6  ;;  %s1182_s15 = scalar_lea.sflag [#allocation3], %s201_s7 }
  0x1f   : > { %249 = vperm.xlu1 %848, %v231_v3   ;;  %239 = vperm.xlu0 %847, %v229_v4   ;;  %s1153_s9 = scalar_lea.vmem [#allocation2], %s751_s8 }
  0x20   : > { %s655_s11 = sshll.u32 %s1153_s9, 4  ;;  %s1175_s11 = int_to_ptr.vmem [resolvable:$true] %s655_s11 }
  0x21   : > { %s880_s23 = scalar_lea.vmem %s1175_s11, 1024  ;;  %p887_p1 = scmp.lt.s32.totalorder %s1175_s11, %s885_s27 }
  0x22   : > { %p881_p12 = scmp.ne.s32.totalorder %s1175_s11, %s880_s23  ;;  %p888_p2 = scmp.lt.s32.totalorder %s886_s28, %s880_s23 }
  0x23   : > { %850 = vset.pattern.permute.xlu1 %v961_v5  ;;  %849 = vset.pattern.permute.xlu0 %v961_v5 }
  0x24   : > { %338 = vperm.xlu1 %850, %v229_v4   ;;  %334 = vperm.xlu0 %849, %v228_v2   ;;  %p882_p13 = pnand %p881_p12, %p1029_p4  ;;  %p889_p3 = por %p888_p2, %p887_p1 }
  0x26   : > { %p883_p0 = pneg %p882_p13 }
  0x28   : > { %851 = vset.pattern.permute.xlu1 %v962_v6  ;;  %852 = vset.pattern.permute.xlu0 %v962_v6  ;;  %p890_p5 = pnand %p889_p3, %p883_p0 }
  0x29   : > { %358 = vperm.xlu1 %851, %v228_v2   ;;  %362 = vperm.xlu0 %852, %v229_v4  }
  0x2d   : > { %853 = vset.pattern.permute.xlu1 %v961_v5  ;;  %366 = vperm.xlu0 %852, %v230_v1  }
  0x2e   : > { %342 = vperm.xlu1 %853, %v230_v1  }
  0x31   : > { %855 = vset.pattern.permute.xlu0 %v964_v8 }
  0x32   : > { %346 = vperm.xlu1 %853, %v231_v3   ;;  %552 = vperm.xlu0 %855, %v228_v2  }
  0x36   : > { %854 = vset.pattern.permute.xlu1 %v962_v6  ;;  %564 = vperm.xlu0 %855, %v231_v3  }
  0x37   : > { %370 = vperm.xlu1 %854, %v231_v3  }
  0x3a   : > { %858 = vset.pattern.permute.xlu0 %v965_v9 }
  0x3b   : > { %856 = vset.pattern.permute.xlu1 %v964_v8  ;;  %532 = vperm.xlu0 %858, %v229_v4  }
  0x3c   : > { %556 = vperm.xlu1 %856, %v229_v4  }
  0x3f   : > { %859 = vset.pattern.permute.xlu0 %v964_v8 }
  0x40   : > { %560 = vperm.xlu1 %856, %v230_v1  }
  0x44   : > { %857 = vset.pattern.permute.xlu1 %v965_v9 }
  0x45   : > { %528 = vperm.xlu1 %857, %v228_v2  }
  0x49   : > { %536 = vperm.xlu1 %857, %v230_v1  }
  0x4d   : > { %540 = vperm.xlu1 %857, %v231_v3  }
  0x9a   : > { %v245_v10 = vpop.permute.xlu1 %244  ;;  %v235_v11 = vpop.permute.xlu0 %234 }
  0x9b   : > { %v1058_v18 = vadd.f32 %v235_v11, %v220_v12  ;;  %v1060_v19 = vadd.f32 %v235_v11, %v221_v13  ;;  %v1066_v26 = vadd.f32 %v245_v10, %v224_v16  ;;  %v1068_v27 = vadd.f32 %v245_v10, %v225_v17 }
  0x9d   : > { %v281_v28 = vmul.f32 %v1058_v18, %v1058_v18  ;;  %v282_v29 = vmul.f32 %v1060_v19, %v1060_v19  ;;  %v285_v38 = vmul.f32 %v1066_v26, %v1066_v26  ;;  %v286_v39 = vmul.f32 %v1068_v27, %v1068_v27 }
  0x9e   : > { %v240_v20 = vpop.permute.xlu0 %239  ;;  %v250_v21 = vpop.permute.xlu1 %249 }
  0x9f   : > { %v1062_v24 = vadd.f32 %v240_v20, %v222_v14  ;;  %v1064_v25 = vadd.f32 %v240_v20, %v223_v15  ;;  %v1078_v32 = vadd.f32 %v250_v21, %v226_v22  ;;  %v1080_v33 = vadd.f32 %v250_v21, %v227_v23 }
  0xa1   : > { %v260_v30 = vadd.f32 %v1062_v24, %v1058_v18  ;;  %v269_v31 = vadd.f32 %v1064_v25, %v1060_v19  ;;  %v283_v34 = vmul.f32 %v1062_v24, %v1062_v24  ;;  %v284_v35 = vmul.f32 %v1064_v25, %v1064_v25 }
  0xa2   : > { %v287_v44 = vmul.f32 %v1078_v32, %v1078_v32  ;;  %v288_v45 = vmul.f32 %v1080_v33, %v1080_v33 }
  0xa3   : > { %v261_v36 = vadd.f32 %v260_v30, %v1066_v26  ;;  %v270_v37 = vadd.f32 %v269_v31, %v1068_v27  ;;  %v289_v40 = vadd.f32 %v283_v34, %v281_v28  ;;  %v298_v41 = vadd.f32 %v284_v35, %v282_v29  ;;  %v339_v4 = vpop.permute.xlu1 %338  ;;  %v335_v30 = vpop.permute.xlu0 %334 }
  0xa5   : > { %v262_v42 = vadd.f32 %v261_v36, %v1078_v32  ;;  %v271_v43 = vadd.f32 %v270_v37, %v1080_v33  ;;  %v290_v46 = vadd.f32 %v289_v40, %v285_v38  ;;  %v299_v47 = vadd.f32 %v298_v41, %v286_v39 }
  0xa7   : > { %v263_v48 = vrot.slane %v262_v42, 4  ;;  %v272_v49 = vrot.slane %v271_v43, 4  ;;  %v291_v50 = vadd.f32 %v290_v46, %v287_v44  ;;  %v300_v51 = vadd.f32 %v299_v47, %v288_v45 }
  0xa8   : > { %v359_v20 = vpop.permute.xlu1 %358  ;;  %v363_v34 = vpop.permute.xlu0 %362 }
  0xa9   : > { %v264_v52 = vadd.f32 %v263_v48, %v262_v42  ;;  %v273_v53 = vadd.f32 %v272_v49, %v271_v43  ;;  %v292_v54 = vrot.slane %v291_v50, 4  ;;  %v301_v55 = vrot.slane %v300_v51, 4 }
  0xab   : > { %v265_v56 = vrot.slane %v264_v52, 2  ;;  %v274_v57 = vrot.slane %v273_v53, 2  ;;  %v293_v58 = vadd.f32 %v292_v54, %v291_v50  ;;  %v302_v59 = vadd.f32 %v301_v55, %v300_v51 }
  0xad   : > { %v266_v60 = vadd.f32 %v265_v56, %v264_v52  ;;  %v275_v61 = vadd.f32 %v274_v57, %v273_v53  ;;  %v294_v62 = vrot.slane %v293_v58, 2  ;;  %v303_v63 = vrot.slane %v302_v59, 2  ;;  %v343_v29 = vpop.permute.xlu1 %342  ;;  %v367_v56 = vpop.permute.xlu0 %366 }
  0xaf   : > { %v267_v0 = vrot.slane %v266_v60, 1  ;;  %v276_v1 = vrot.slane %v275_v61, 1  ;;  %v295_v2 = vadd.f32 %v294_v62, %v293_v58  ;;  %v304_v3 = vadd.f32 %v303_v63, %v302_v59 }
  0xb1   : > { %v268_v5 = vadd.f32 %v267_v0, %v266_v60  ;;  %v277_v6 = vadd.f32 %v276_v1, %v275_v61  ;;  %v296_v8 = vrot.slane %v295_v2, 1  ;;  %v305_v9 = vrot.slane %v304_v3, 1  ;;  %v347_v31 = vpop.permute.xlu1 %346 }
  0xb3   : > { %v279_v10 = vmul.f32 0.03125, %v268_v5  ;;  %v280_v11 = vmul.f32 0.03125, %v277_v6  ;;  %v297_v12 = vadd.f32 %v296_v8, %v295_v2  ;;  %v306_v13 = vadd.f32 %v305_v9, %v304_v3 }
  0xb5   : > { %v309_v14 = vmul.f32 %v279_v10, %v279_v10  ;;  %v310_v15 = vmul.f32 %v280_v11, %v280_v11  ;;  %v307_v16 = vmul.f32 0.03125, %v297_v12  ;;  %v308_v17 = vmul.f32 0.03125, %v306_v13  ;;  %v385_v12 = vld [vmem:[%s1230_s2 + $0x20] sm:$0xff] }
  0xb6   : > { %v315_v35 = vsub.f32 %v1062_v24, %v279_v10  ;;  %v317_v36 = vsub.f32 %v1066_v26, %v279_v10  ;;  %v313_v37 = vsub.f32 %v1058_v18, %v279_v10  ;;  %v319_v38 = vsub.f32 %v1078_v32, %v279_v10  ;;  %v371_v55 = vpop.permute.xlu1 %370  ;;  %v381_v13 = vld [vmem:[%s1230_s2] sm:$0xff] }
  0xb7   : > { %v311_v21 = vsub.f32 %v307_v16, %v309_v14  ;;  %v312_v22 = vsub.f32 %v308_v17, %v310_v15  ;;  %v316_v40 = vsub.f32 %v1064_v25, %v280_v11  ;;  %v318_v41 = vsub.f32 %v1068_v27, %v280_v11  ;;  %v386_v14 = vld [vmem:[%s1230_s2 + $0x28] sm:$0xff]  ;;  %v387_v16 = vld [vmem:[%s1230_s2 + $0x30] sm:$0xff] }
  0xb8   : > { %v314_v42 = vsub.f32 %v1060_v19, %v280_v11  ;;  %v320_v43 = vsub.f32 %v1080_v33, %v280_v11  ;;  %v382_v15 = vld [vmem:[%s1230_s2 + $0x8] sm:$0xff]  ;;  %v383_v17 = vld [vmem:[%s1230_s2 + $0x10] sm:$0xff] }
  0xb9   : > { %v321_v23 = vadd.f32 1e-05, %v311_v21  ;;  %v322_v28 = vadd.f32 1e-05, %v312_v22  ;;  %v384_v21 = vld [vmem:[%s1230_s2 + $0x18] sm:$0xff]  ;;  %v553_v22 = vpop.permute.xlu0 %552 }
  0xbb   : > { %860 = vrsqrt.f32 %v321_v23  ;;  %v557_v23 = vpop.permute.xlu1 %556 }
  0xbc   : > { %862 = vrsqrt.f32 %v322_v28 }
  0xc5   : > { %v861_v39 = vpop.eup %860 }
  0xc6   : > { %v863_v44 = vpop.eup %862  ;;  %v327_v45 = vmul.f32 %v861_v39, %v315_v35  ;;  %v329_v46 = vmul.f32 %v861_v39, %v317_v36  ;;  %v325_v47 = vmul.f32 %v861_v39, %v313_v37  ;;  %v331_v48 = vmul.f32 %v861_v39, %v319_v38 }
  0xc7   : > { %v328_v49 = vmul.f32 %v863_v44, %v316_v40  ;;  %v330_v50 = vmul.f32 %v863_v44, %v318_v41  ;;  %v326_v51 = vmul.f32 %v863_v44, %v314_v42  ;;  %v332_v52 = vmul.f32 %v863_v44, %v320_v43  ;;  %v561_v43 = vpop.permute.xlu1 %560 }
  0xc8   : > { %v351_v53 = vmul.f32 %v339_v4, %v327_v45  ;;  %v349_v54 = vmul.f32 %v335_v30, %v325_v47  ;;  %v353_v61 = vmul.f32 %v343_v29, %v329_v46  ;;  %v355_v62 = vmul.f32 %v347_v31, %v331_v48 }
  0xc9   : > { %v352_v57 = vmul.f32 %v339_v4, %v328_v49  ;;  %v354_v58 = vmul.f32 %v343_v29, %v330_v50  ;;  %v350_v59 = vmul.f32 %v335_v30, %v326_v51  ;;  %v356_v60 = vmul.f32 %v347_v31, %v332_v52 }
  0xca   : > { %v375_v63 = vadd.f32 %v363_v34, %v351_v53  ;;  %v373_v0 = vadd.f32 %v359_v20, %v349_v54  ;;  %v379_v9 = vadd.f32 %v371_v55, %v355_v62  ;;  %v377_v10 = vadd.f32 %v367_v56, %v353_v61  ;;  %v565_v53 = vpop.permute.xlu0 %564 }
  0xcb   : > { %v376_v1 = vadd.f32 %v363_v34, %v352_v57  ;;  %v380_v2 = vadd.f32 %v371_v55, %v356_v60  ;;  %v378_v3 = vadd.f32 %v367_v56, %v354_v58  ;;  %v374_v5 = vadd.f32 %v359_v20, %v350_v59  ;;  %v388_v20 = vld [vmem:[%s1230_s2 + $0x38] sm:$0xff] }
  0xcc   : > { %v774_v6 = vpack.c.bf16 %v375_v63, %v373_v0  ;;  %v778_v4 = vpack.c.bf16 %v379_v9, %v377_v10  ;;  %v529_v63 = vpop.permute.xlu1 %528 }
  0xcd   : > { %v772_v8 = vpack.c.bf16 %v376_v1, %v374_v5  ;;  %v776_v11 = vpack.c.bf16 %v380_v2, %v378_v3 }
  0xce   : > { %v533_v10 = vpop.permute.xlu0 %532 }
  0xcf   : > { %773 = vmatprep.subr.bf16.mxu0 %v772_v8  ;;  %780 = vmatprep.subr.bf16.mxu1 %v772_v8 }
  0xd0   : > { %775 = vmatpush1.bf16.msra.mxu0 %v774_v6  ;;  %782 = vmatpush1.bf16.msra.mxu1 %v774_v6 }
  0xd1   : > { %777 = vmatprep.subr.bf16.mxu0 %v776_v11  ;;  %781 = vmatprep.subr.bf16.mxu1 %v776_v11 }
  0xd4   : > { %779 = vmatpush1.bf16.msra.mxu0 %v778_v4  ;;  %783 = vmatpush1.bf16.msra.mxu1 %v778_v4 }
  0xd7   : > { %760 = vmatmul.mubr.msk.f32.vlgmr.msra.gmra.mrb[0].mxu1 %vm389_vm0, %v385_v12  ;;  %756 = vmatmul.mubr.msk.f32.vlgmr.msra.gmra.mrb[0].mxu0 %vm389_vm0, %v381_v13 }
  0xd8   : > { %508 = vmatprep.mubr.f32.mxu1 %v963_v7  ;;  %484 = vmatprep.mubr.f32.mxu0 %v963_v7 }
  0xdb   : > { %761 = vmatmul.mubr.msk.f32.gmra.mrb[2].mxu1 %vm389_vm0, %v386_v14  ;;  %757 = vmatmul.mubr.msk.f32.gmra.mrb[2].mxu0 %vm389_vm0, %v382_v15 }
  0xdc   : > { %514 = vmatprep.mubr.f32.mxu1 %v963_v7  ;;  %490 = vmatprep.mubr.f32.mxu0 %v963_v7 }
  0xdf   : > { %762 = vmatmul.mubr.msk.f32.gmra.mrb[4].mxu1 %vm389_vm0, %v387_v16  ;;  %758 = vmatmul.mubr.msk.f32.gmra.mrb[4].mxu0 %vm389_vm0, %v383_v17 }
  0xe0   : > { %520 = vmatprep.mubr.f32.mxu1 %v963_v7  ;;  %496 = vmatprep.mubr.f32.mxu0 %v963_v7 }
  0xe3   : > { %763 = vmatmul.mubr.msk.f32.gmra.mrb[6].mxu1 %vm389_vm0, %v388_v20  ;;  %759 = vmatmul.mubr.msk.f32.gmra.mrb[6].mxu0 %vm389_vm0, %v384_v21 }
 0x1aa   : > { %v504_v28 = vpop.f32.mrb[0].mxu1  ;;  %v480_v29 = vpop.f32.mrb[0].mxu0 }
 0x1ab   : > { %v567_v30 = vadd.f32 %v553_v22, %v504_v28  ;;  %v506_v31 = vpop.f32.mrb[1].mxu1  ;;  %v482_v34 = vpop.f32.mrb[1].mxu0  ;;  %v543_v5 = vadd.f32 %v529_v63, %v480_v29 }
 0x1ac   : > { %v568_v35 = vadd.f32 %v553_v22, %v506_v31  ;;  %v544_v9 = vadd.f32 %v529_v63, %v482_v34 }
 0x1ad   : > { %v583_v36 = vmul.f32 0.70710677, %v567_v30  ;;  %v575_v1 = vmul.f32 0.5, %v567_v30 }
 0x1ae   : > { %v584_v37 = vmul.f32 0.70710677, %v568_v35  ;;  %v510_v38 = vpop.f32.mrb[2].mxu1  ;;  %v486_v7 = vpop.f32.mrb[2].mxu0  ;;  %v576_v6 = vmul.f32 0.5, %v568_v35 }
 0x1af   : > { %864 = verf.f32 %v583_v36  ;;  %v569_v39 = vadd.f32 %v557_v23, %v510_v38  ;;  %v512_v40 = vpop.f32.mrb[3].mxu1  ;;  %v488_v41 = vpop.f32.mrb[3].mxu0  ;;  %v545_v17 = vadd.f32 %v533_v10, %v486_v7 }
 0x1b0   : > { %866 = verf.f32 %v584_v37  ;;  %v570_v42 = vadd.f32 %v557_v23, %v512_v40  ;;  %v537_v23 = vpop.permute.xlu1 %536  ;;  %v546_v28 = vadd.f32 %v533_v10, %v488_v41 }
 0x1b1   : > { %v585_v44 = vmul.f32 0.70710677, %v569_v39  ;;  %v577_v14 = vmul.f32 0.5, %v569_v39 }
 0x1b2   : > { %v586_v45 = vmul.f32 0.70710677, %v570_v42  ;;  %v516_v46 = vpop.f32.mrb[4].mxu1  ;;  %v492_v47 = vpop.f32.mrb[4].mxu0  ;;  %v578_v20 = vmul.f32 0.5, %v570_v42 }
 0x1b3   : > { %868 = verf.f32 %v585_v44  ;;  %v571_v48 = vadd.f32 %v561_v43, %v516_v46  ;;  %v518_v49 = vpop.f32.mrb[5].mxu1  ;;  %v494_v50 = vpop.f32.mrb[5].mxu0 }
 0x1b4   : > { %870 = verf.f32 %v586_v45  ;;  %v572_v51 = vadd.f32 %v561_v43, %v518_v49  ;;  %v548_v44 = vadd.f32 %v537_v23, %v494_v50 }
 0x1b5   : > { %v587_v52 = vmul.f32 0.70710677, %v571_v48  ;;  %v579_v37 = vmul.f32 0.5, %v571_v48  ;;  %v541_v48 = vpop.permute.xlu1 %540 }
 0x1b6   : > { %v588_v54 = vmul.f32 0.70710677, %v572_v51  ;;  %v522_v55 = vpop.f32.mrb[6].mxu1  ;;  %v1144_v56 = vpop.f32.mrb[6].mxu0  ;;  %v580_v39 = vmul.f32 0.5, %v572_v51 }
 0x1b7   : > { %872 = verf.f32 %v587_v52  ;;  %v573_v57 = vadd.f32 %v565_v53, %v522_v55  ;;  %v524_v58 = vpop.f32.mrb[7].mxu1  ;;  %v1146_v59 = vpop.f32.mrb[7].mxu0  ;;  %v549_v50 = vadd.f32 %v541_v48, %v1144_v56 }
 0x1b8   : > { %874 = verf.f32 %v588_v54  ;;  %v574_v60 = vadd.f32 %v565_v53, %v524_v58 }
 0x1b9   : > { %v865_v61 = vpop.eup %864  ;;  %v589_v62 = vmul.f32 0.70710677, %v573_v57  ;;  %v581_v52 = vmul.f32 0.5, %v573_v57  ;;  %v550_v57 = vadd.f32 %v541_v48, %v1146_v59 }
 0x1ba   : > { %v867_v0 = vpop.eup %866  ;;  %v599_v2 = vadd.f32 1.0, %v865_v61  ;;  %v590_v3 = vmul.f32 0.70710677, %v574_v60 }
 0x1bb   : > { %v600_v8 = vadd.f32 1.0, %v867_v0  ;;  %876 = verf.f32 %v589_v62 }
 0x1bc   : > { %878 = verf.f32 %v590_v3  ;;  %v607_v11 = vmul.f32 %v599_v2, %v575_v1 }
 0x1bd   : > { %v869_v4 = vpop.eup %868  ;;  %v608_v12 = vmul.f32 %v600_v8, %v576_v6 }
 0x1be   : > { %v871_v13 = vpop.eup %870  ;;  %v601_v15 = vadd.f32 1.0, %v869_v4  ;;  %v615_v16 = vmul.f32 %v607_v11, %v543_v5 }
 0x1bf   : > { %v602_v21 = vadd.f32 1.0, %v871_v13  ;;  %v616_v22 = vmul.f32 %v608_v12, %v544_v9 }
 0x1c0   : > { %v623_v29 = vadd.f32 %v615_v16, %v1058_v18  ;;  %v609_v30 = vmul.f32 %v601_v15, %v577_v14  ;;  %v547_v18 = vadd.f32 %v537_v23, %v492_v47  ;;  %v582_v47 = vmul.f32 0.5, %v574_v60 }
 0x1c1   : > { %v873_v31 = vpop.eup %872  ;;  %v624_v34 = vadd.f32 %v616_v22, %v1060_v19  ;;  %v610_v35 = vmul.f32 %v602_v21, %v578_v20 }
 0x1c2   : > { %v875_v36 = vpop.eup %874  ;;  %v603_v38 = vadd.f32 1.0, %v873_v31  ;;  %631 = vst [vmem:[%s1153_s9] sm:$0xff] %v623_v29  ;;  %v617_v7 = vmul.f32 %v609_v30, %v545_v17 }
 0x1c3   : > { %v604_v40 = vadd.f32 1.0, %v875_v36  ;;  %632 = vst [vmem:[%s1153_s9 + $0x8] sm:$0xff] %v624_v34  ;;  %v618_v41 = vmul.f32 %v610_v35, %v546_v28 }
 0x1c4   : > { %v611_v42 = vmul.f32 %v603_v38, %v579_v37  ;;  %v625_v19 = vadd.f32 %v617_v7, %v1062_v24 }
 0x1c5   : > { %v877_v43 = vpop.eup %876  ;;  %v612_v45 = vmul.f32 %v604_v40, %v580_v39  ;;  %v626_v46 = vadd.f32 %v618_v41, %v1064_v25 }
 0x1c6   : > { %v879_v49 = vpop.eup %878  ;;  %v605_v51 = vadd.f32 1.0, %v877_v43  ;;  %v619_v53 = vmul.f32 %v611_v42, %v547_v18  ;;  %633 = vst [vmem:[%s1153_s9 + $0x10] sm:$0xff] %v625_v19 }
 0x1c7   : > { %v606_v54 = vadd.f32 1.0, %v879_v49  ;;  %v620_v55 = vmul.f32 %v612_v45, %v548_v44  ;;  %634 = vst [vmem:[%s1153_s9 + $0x18] sm:$0xff] %v626_v46 }
 0x1c8   : > { %v627_v24 = vadd.f32 %v619_v53, %v1066_v26  ;;  %v613_v25 = vmul.f32 %v605_v51, %v581_v52 }
 0x1c9   : > { %v628_v58 = vadd.f32 %v620_v55, %v1068_v27  ;;  %v614_v61 = vmul.f32 %v606_v54, %v582_v47 }
 0x1ca   : > { %635 = vst [vmem:[%s1153_s9 + $0x20] sm:$0xff] %v627_v24  ;;  %v621_v60 = vmul.f32 %v613_v25, %v549_v50 }
 0x1cb   : > { %636 = vst [vmem:[%s1153_s9 + $0x28] sm:$0xff] %v628_v58  ;;  %v622_v62 = vmul.f32 %v614_v61, %v550_v57 }
 0x1cc   : > { %v629_v26 = vadd.f32 %v621_v60, %v1078_v32 }
 0x1cd   : > { %v630_v27 = vadd.f32 %v622_v62, %v1080_v33 }
 0x1ce   : > { %637 = vst [vmem:[%s1153_s9 + $0x30] sm:$0xff] %v629_v26 }
 0x1cf   : > { %638 = vst [vmem:[%s1153_s9 + $0x38] sm:$0xff] %v630_v27 }
 0x1d0   : > { %893 = shalt.err (!%p890_p5)
}
 0x1d1   : > { %s894_s29 = scalar_lea.hbm %s1173_s21, 1024  ;;  %s898_s5 = scalar_lea.hbm %s1231_s3, 2048 }
 0x1d2   : > { %p895_p6 = scmp.ne.s32.totalorder %s1173_s21, %s894_s29  ;;  %p899_p10 = scmp.lt.u32.totalorder %s1173_s21, %s1231_s3 }
 0x1d3   : > { %p900_p11 = scmp.lt.u32.totalorder %s898_s5, %s894_s29  ;;  %p902_p13 = scmp.lt.u32.totalorder %s894_s29, %s1173_s21 }
 0x1d4   : > { %p896_p7 = pnand %p895_p6, %p1029_p4 }
 0x1d5   : > { %p901_p12 = por %p900_p11, %p899_p10 }
 0x1d6   : > { %p897_p9 = pneg %p896_p7 }
 0x1d7   : > { %p903_p0 = por %p902_p13, %p901_p12 }
 0x1d9   : > { %p904_p1 = pnand %p903_p0, %p897_p9 }
 0x1db   : > { %907 = shalt.err (!%p904_p1)
}
 0x1dc   : > { %s967_s8 = smov 256   ;;  %s968_s9 = smov 16  }
 0x1dd   : > { %784 = dma.vmem_to_hbm [thread:$0]  (%p1029_p4), %s1175_s11, 1024, %s1173_s21, %s1182_s15, %s967_s8, %s967_s8, %s968_s9  }
 0x1de PF: > { %p790_p2 = scmp.ge.s32.totalorder %s958_s17, 2  ;;  %s670_s10 = sand.u32 1, %s938_s12  }
 0x1df   : > { %s671_s18 = scalar_lea.sflag [#allocation3], %s670_s10 }
 0x1e0   : > { %p787_p3 = pnand %p790_p2, %p1036_p8 }
 0x1e2   : > { %933 = dma.done.wait (!%p787_p3), %s671_s18, 1024  }
 0x1e3   : > { %935 = vsyncadd (!%p787_p3), %s671_s18, 4294966272  ;;  %s16_s17 = sadd.s32 1, %s958_s17   ;;  %s1234_s12 = smov %s942_s13 }
 0x1e4   : > { %p13_p5 = scmp.ge.s32.totalorder %s16_s17, 4   ;;  %s1235_s13 = smov %s946_s14 }
 0x1e5   : > { %s1236_s14 = smov %s1042_s25  ;;  %s1237_s15 = smov %s954_s16 }
 0x1e6   : > { %s1238_s16 = smov %s1240_s20  ;;  %15 = sbr.rel (!%p13_p5) target bundleno = 4 (0x4), region = 70 }
 0x1ed   :  { %676 = vsyncpa [#allocation3], 1 }
 0x1ee   :  { %678 = vsyncpa [#allocation3 + $0x1], 1 }

</bundles_post_ra>
